<compile_context>
chip_gen: v7x
topology: tpu7x:2x2x1
jax: 0.10.0
libtpu: 0.0.40
codegen_flags: <defaults>
</compile_context>

<pallas_src>
import functools

import jax
import jax.numpy as jnp
from jax.experimental import pallas as pl
from jax.experimental.pallas import tpu as pltpu


def linear_fm_kernel(w_ref, b_ref, x_ref, o_ref):
    # w_ref: SMEM (D_out, D_in) f32   (PyTorch nn.Linear layout, used as-is)
    # b_ref: SMEM (D_out,)      f32
    # x_ref: VMEM (D_in, TB)    f32   (batch on lanes)
    # o_ref: VMEM (D_out, TB)   f32   (batch on lanes -> lane-dense stores)
    d_out, d_in = w_ref.shape

    x = x_ref[...]                                        # (D_in, TB), loaded once

    # Hoist all weight/bias scalars out of the unrolled MAC loops (review #7).
    w = [[w_ref[j, k] for k in range(d_in)] for j in range(d_out)]
    b = [b_ref[j] for j in range(d_out)]

    # Unrolled scalar*vector MACs on the VPU; each x row slice is reused for both
    # output rows (D_in = 6, D_out = 2 -> 12 MACs total, fully unrolled).
    acc = [None] * d_out
    for k in range(d_in):
        xk = x[k:k + 1, :]                                # (1, TB) static slice
        for j in range(d_out):
            t = xk * w[j][k]
            acc[j] = t if acc[j] is None else acc[j] + t

    # Direct per-row stores; no concatenate / (D_out, TB) intermediate (review #6).
    for j in range(d_out):
        o_ref[j:j + 1, :] = (acc[j] + b[j]).astype(o_ref.dtype)


def _pick_batch_tile(batch, tb):
    """Lane-dense batch tile: multiple of 128, large enough to amortize per-step
    overhead, small enough for VMEM, and sized so mid-size batches still produce
    several grid steps (v7x megacore + pipelining)."""
    TB_MAX = 65536          # x tile = 1.5 MiB HBM traffic; ~8 MiB VMEM double-buffered
    TARGET_STEPS = 8        # aim for >=2 (ideally 4-8) grid steps when B allows it
    if tb is None:
        tb = pl.cdiv(batch, TARGET_STEPS)
    tb = max(128, min(TB_MAX, pl.cdiv(int(tb), 128) * 128))
    return tb


@functools.partial(jax.jit, static_argnames=("tb",))
def simple_classifier_forward_fm(x_fm, weight, bias, *, tb=None):
    """Recommended entry point: batch-on-lanes (features-major) layout.

    x_fm:   (D_in, B)      float32   -- activations, batch on the lane axis
    weight: (D_out, D_in)  float32   -- PyTorch nn.Linear convention
    bias:   (D_out,)       float32
    returns (D_out, B)     float32   == (weight @ x_fm) + bias[:, None]
    """
    d_in, B = x_fm.shape
    d_out = weight.shape[0]

    tb = _pick_batch_tile(B, tb)
    grid = (pl.cdiv(B, tb),)        # no zero-pad: boundary block handled by Pallas

    return pl.pallas_call(
        linear_fm_kernel,
        out_shape=jax.ShapeDtypeStruct((d_out, B), jnp.float32),
        grid=grid,
        in_specs=[
            pl.BlockSpec(memory_space=pltpu.MemorySpace.SMEM),   # weight (whole)
            pl.BlockSpec(memory_space=pltpu.MemorySpace.SMEM),   # bias   (whole)
            pl.BlockSpec((d_in, tb), lambda i: (0, i)),          # x tile (batch axis)
        ],
        out_specs=pl.BlockSpec((d_out, tb), lambda i: (0, i)),
        compiler_params=pltpu.CompilerParams(
            dimension_semantics=("parallel",),    # megacore split on v7x
            vmem_limit_bytes=32 * 1024 * 1024,    # headroom over v5e's 16 MiB default
        ),
    )(weight, bias, x_fm)


def simple_classifier_forward(x, weight, bias, *, tb=None):
    """PyTorch-convention compatibility wrapper: x (B, D_in) -> (B, D_out).

    Note: the two transposes cost two extra HBM passes; prefer
    `simple_classifier_forward_fm` with activations kept batch-on-lanes upstream.
    """
    return simple_classifier_forward_fm(x.T, weight, bias, tb=tb).T


def init_params(key, input_size, output_size):
    """Deterministic PyTorch-style nn.Linear init: U(-1/sqrt(fan_in), 1/sqrt(fan_in))."""
    k_w, k_b = jax.random.split(key)
    bound = 1.0 / jnp.sqrt(jnp.float32(input_size))
    weight = jax.random.uniform(
        k_w, (output_size, input_size), jnp.float32, minval=-bound, maxval=bound
    )
    bias = jax.random.uniform(
        k_b, (output_size,), jnp.float32, minval=-bound, maxval=bound
    )
    return weight, bias


if __name__ == "__main__":
    key = jax.random.PRNGKey(0)
    k_x, k_p = jax.random.split(key)

    batch = 256        # small demo batch; tb auto-selects 128 -> grid=(2,) so the
                       # batch tiling / parallel axis is actually exercised
    input_size = 6     # force/torque feature dimension from the reference script
    output_size = 2    # binary-classification logits

    weight, bias = init_params(k_p, input_size, output_size)

    # Primary path: activations produced directly in batch-on-lanes layout (D_in, B),
    # as a real data-loading pipeline would keep them. Zero wrapper-side HBM passes.
    x_fm = jax.random.uniform(k_x, (input_size, batch), jnp.float32)
    out_fm = jax.block_until_ready(simple_classifier_forward_fm(x_fm, weight, bias))

    ref_fm = weight @ x_fm + bias[:, None]   # == nn.Linear applied to rows of x_fm.T
    assert out_fm.shape == (output_size, batch)
    assert jnp.allclose(out_fm, ref_fm, atol=1e-5, rtol=1e-5)

    # Compatibility path: PyTorch (B, D_in) -> (B, D_out) convention.
    x_bm = x_fm.T
    out_bm = jax.block_until_ready(simple_classifier_forward(x_bm, weight, bias))
    ref_bm = x_bm @ weight.T + bias
    assert out_bm.shape == (batch, output_size)
    assert jnp.allclose(out_bm, ref_bm, atol=1e-5, rtol=1e-5)

    print("KERNEL_OK")
</pallas_src>

<mosaic_0001>
module attributes {stable_mosaic.version = 11 : i64} {
  func.func @linear_fm_kernel(%arg0: i32, %arg1: memref<2x6xf32, #tpu.memory_space<smem>>, %arg2: memref<2xf32, #tpu.memory_space<smem>>, %arg3: memref<6x128xf32, #tpu.memory_space<vmem>>, %arg4: memref<2x128xf32, #tpu.memory_space<vmem>>) attributes {dimension_semantics = [#tpu.dimension_semantics<parallel>], iteration_bounds = array<i64: 2>, scalar_prefetch = 0 : i64, scratch_operands = 0 : i64, tpu.core_type = #tpu.core_type<tc>, window_params = [{transform_indices = @transform_0, window_bounds = array<i64: 2, 6>}, {transform_indices = @transform_1, window_bounds = array<i64: 2>}, {transform_indices = @transform_2, window_bounds = array<i64: 6, 128>}, {transform_indices = @transform_3, window_bounds = array<i64: 2, 128>}]} {
    %c0 = arith.constant 0 : index
    %c0_0 = arith.constant 0 : index
    %0 = vector.load %arg3[%c0, %c0_0] : memref<6x128xf32, #tpu.memory_space<vmem>>, vector<6x128xf32>
    %c0_1 = arith.constant 0 : index
    %c0_2 = arith.constant 0 : index
    %1 = memref.load %arg1[%c0_1, %c0_2] : memref<2x6xf32, #tpu.memory_space<smem>>
    %c0_3 = arith.constant 0 : index
    %c1 = arith.constant 1 : index
    %2 = memref.load %arg1[%c0_3, %c1] : memref<2x6xf32, #tpu.memory_space<smem>>
    %c0_4 = arith.constant 0 : index
    %c2 = arith.constant 2 : index
    %3 = memref.load %arg1[%c0_4, %c2] : memref<2x6xf32, #tpu.memory_space<smem>>
    %c0_5 = arith.constant 0 : index
    %c3 = arith.constant 3 : index
    %4 = memref.load %arg1[%c0_5, %c3] : memref<2x6xf32, #tpu.memory_space<smem>>
    %c0_6 = arith.constant 0 : index
    %c4 = arith.constant 4 : index
    %5 = memref.load %arg1[%c0_6, %c4] : memref<2x6xf32, #tpu.memory_space<smem>>
    %c0_7 = arith.constant 0 : index
    %c5 = arith.constant 5 : index
    %6 = memref.load %arg1[%c0_7, %c5] : memref<2x6xf32, #tpu.memory_space<smem>>
    %c1_8 = arith.constant 1 : index
    %c0_9 = arith.constant 0 : index
    %7 = memref.load %arg1[%c1_8, %c0_9] : memref<2x6xf32, #tpu.memory_space<smem>>
    %c1_10 = arith.constant 1 : index
    %c1_11 = arith.constant 1 : index
    %8 = memref.load %arg1[%c1_10, %c1_11] : memref<2x6xf32, #tpu.memory_space<smem>>
    %c1_12 = arith.constant 1 : index
    %c2_13 = arith.constant 2 : index
    %9 = memref.load %arg1[%c1_12, %c2_13] : memref<2x6xf32, #tpu.memory_space<smem>>
    %c1_14 = arith.constant 1 : index
    %c3_15 = arith.constant 3 : index
    %10 = memref.load %arg1[%c1_14, %c3_15] : memref<2x6xf32, #tpu.memory_space<smem>>
    %c1_16 = arith.constant 1 : index
    %c4_17 = arith.constant 4 : index
    %11 = memref.load %arg1[%c1_16, %c4_17] : memref<2x6xf32, #tpu.memory_space<smem>>
    %c1_18 = arith.constant 1 : index
    %c5_19 = arith.constant 5 : index
    %12 = memref.load %arg1[%c1_18, %c5_19] : memref<2x6xf32, #tpu.memory_space<smem>>
    %c0_20 = arith.constant 0 : index
    %13 = memref.load %arg2[%c0_20] : memref<2xf32, #tpu.memory_space<smem>>
    %c1_21 = arith.constant 1 : index
    %14 = memref.load %arg2[%c1_21] : memref<2xf32, #tpu.memory_space<smem>>
    %15 = vector.extract_strided_slice %0 {offsets = [0, 0], sizes = [1, 128], strides = [1, 1]} : vector<6x128xf32> to vector<1x128xf32>
    %16 = vector.broadcast %1 : f32 to vector<1x128xf32>
    %17 = arith.mulf %15, %16 : vector<1x128xf32>
    %18 = vector.broadcast %7 : f32 to vector<1x128xf32>
    %19 = arith.mulf %15, %18 : vector<1x128xf32>
    %20 = vector.extract_strided_slice %0 {offsets = [1, 0], sizes = [1, 128], strides = [1, 1]} : vector<6x128xf32> to vector<1x128xf32>
    %21 = vector.broadcast %2 : f32 to vector<1x128xf32>
    %22 = arith.mulf %20, %21 : vector<1x128xf32>
    %23 = arith.addf %17, %22 : vector<1x128xf32>
    %24 = vector.broadcast %8 : f32 to vector<1x128xf32>
    %25 = arith.mulf %20, %24 : vector<1x128xf32>
    %26 = arith.addf %19, %25 : vector<1x128xf32>
    %27 = vector.extract_strided_slice %0 {offsets = [2, 0], sizes = [1, 128], strides = [1, 1]} : vector<6x128xf32> to vector<1x128xf32>
    %28 = vector.broadcast %3 : f32 to vector<1x128xf32>
    %29 = arith.mulf %27, %28 : vector<1x128xf32>
    %30 = arith.addf %23, %29 : vector<1x128xf32>
    %31 = vector.broadcast %9 : f32 to vector<1x128xf32>
    %32 = arith.mulf %27, %31 : vector<1x128xf32>
    %33 = arith.addf %26, %32 : vector<1x128xf32>
    %34 = vector.extract_strided_slice %0 {offsets = [3, 0], sizes = [1, 128], strides = [1, 1]} : vector<6x128xf32> to vector<1x128xf32>
    %35 = vector.broadcast %4 : f32 to vector<1x128xf32>
    %36 = arith.mulf %34, %35 : vector<1x128xf32>
    %37 = arith.addf %30, %36 : vector<1x128xf32>
    %38 = vector.broadcast %10 : f32 to vector<1x128xf32>
    %39 = arith.mulf %34, %38 : vector<1x128xf32>
    %40 = arith.addf %33, %39 : vector<1x128xf32>
    %41 = vector.extract_strided_slice %0 {offsets = [4, 0], sizes = [1, 128], strides = [1, 1]} : vector<6x128xf32> to vector<1x128xf32>
    %42 = vector.broadcast %5 : f32 to vector<1x128xf32>
    %43 = arith.mulf %41, %42 : vector<1x128xf32>
    %44 = arith.addf %37, %43 : vector<1x128xf32>
    %45 = vector.broadcast %11 : f32 to vector<1x128xf32>
    %46 = arith.mulf %41, %45 : vector<1x128xf32>
    %47 = arith.addf %40, %46 : vector<1x128xf32>
    %48 = vector.extract_strided_slice %0 {offsets = [5, 0], sizes = [1, 128], strides = [1, 1]} : vector<6x128xf32> to vector<1x128xf32>
    %49 = vector.broadcast %6 : f32 to vector<1x128xf32>
    %50 = arith.mulf %48, %49 : vector<1x128xf32>
    %51 = arith.addf %44, %50 : vector<1x128xf32>
    %52 = vector.broadcast %12 : f32 to vector<1x128xf32>
    %53 = arith.mulf %48, %52 : vector<1x128xf32>
    %54 = arith.addf %47, %53 : vector<1x128xf32>
    %55 = vector.broadcast %13 : f32 to vector<1x128xf32>
    %56 = arith.addf %51, %55 : vector<1x128xf32>
    %c0_22 = arith.constant 0 : index
    %c0_23 = arith.constant 0 : index
    %57 = vector.load %arg4[%c0_22, %c0_23] : memref<2x128xf32, #tpu.memory_space<vmem>>, vector<1x128xf32>
    tpu.vector_store %arg4[%c0_22, %c0_23], %56 {strides = array<i32>} : memref<2x128xf32, #tpu.memory_space<vmem>>, vector<1x128xf32>,
    %58 = vector.broadcast %14 : f32 to vector<1x128xf32>
    %59 = arith.addf %54, %58 : vector<1x128xf32>
    %c1_24 = arith.constant 1 : index
    %c0_25 = arith.constant 0 : index
    %60 = vector.load %arg4[%c1_24, %c0_25] : memref<2x128xf32, #tpu.memory_space<vmem>>, vector<1x128xf32>
    tpu.vector_store %arg4[%c1_24, %c0_25], %59 {strides = array<i32>} : memref<2x128xf32, #tpu.memory_space<vmem>>, vector<1x128xf32>,
    return
  }
  func.func @transform_0(%arg0: i32) -> (i32, i32) {
    %c0_i32 = arith.constant 0 : i32
    %c0_i32_0 = arith.constant 0 : i32
    %c0_i32_1 = arith.constant 0 : i32
    return %c0_i32, %c0_i32_0 : i32, i32
  }
  func.func @transform_1(%arg0: i32) -> i32 {
    %c0_i32 = arith.constant 0 : i32
    %c0_i32_0 = arith.constant 0 : i32
    return %c0_i32 : i32
  }
  func.func @transform_2(%arg0: i32) -> (i32, i32) {
    %c0_i32 = arith.constant 0 : i32
    %c0_i32_0 = arith.constant 0 : i32
    return %c0_i32, %arg0 : i32, i32
  }
  func.func @transform_3(%arg0: i32) -> (i32, i32) {
    %c0_i32 = arith.constant 0 : i32
    %c0_i32_0 = arith.constant 0 : i32
    return %c0_i32, %arg0 : i32, i32
  }
}

</mosaic_0001>

<bundles_post_ra>
// kernel: simple_classifier_forward_fm.1
= control target key start
LH: loop header
LB: loop body
LE: loop exit
PB: predicated region body
PF: predicated region fallthrough
CT: control target
= control target key end

     0   :  { %8 = vsyncpa [#allocation5], 0  ;;  %s858_s0 = inlined_call_operand.vmem [shape: f32[2,6], index: 0, kind: input, shape index: {}]   ;;  %s859_s1 = inlined_call_operand.vmem [shape: f32[2], index: 1, kind: input, shape index: {}]   ;;  %s860_s2 = inlined_call_operand.hbm [shape: f32[6,256], index: 2, kind: input, shape index: {}]   ;;  %s861_s3 = inlined_call_operand.hbm [shape: f32[2,256], index: 3, kind: output, shape index: {}]  }
   0x1   :  { %9 = vsyncpa [#allocation7], 0 }
   0x2   :  { %10 = vsyncpa [#allocation3], 0 }
   0x3   :  { %12 = vsyncpa [#allocation3 + $0x1], 0 }
   0x4   :  { %13 = vsyncpa [#allocation4], 0 }
   0x5   :  { %15 = vsyncpa [#allocation4 + $0x1], 0  ;;  %s659_s12 = smov 0   ;;  %s661_s13 = smov 0  }
   0x6   :  { %s663_s14 = smov 0   ;;  %s665_s15 = smov 0  }
   0x7 LB: > { %s680_s16 = sadd.s32 4294967295, %s633_s15   ;;  %s404_s17 = sadd.s32 4294967294, %s633_s15   ;;  %s633_s15 = sphi %s665_s15, %s883_s15   ;;  %s629_s14 = sphi %s663_s14, %s882_s14   ;;  %s625_s13 = sphi %s661_s13, %s881_s13   ;;  %s621_s12 = sphi %s659_s12, %s880_s12  }
   0x8   : > { %p83_p0 = scmp.ne.s32.totalorder %s625_s13, %s621_s12  ;;  %p862_p1 = scmp.eq.s32.totalorder %s680_s16, 0 }
   0x9   : > { %p113_p3 = scmp.eq.s32.totalorder %s404_s17, 1  ;;  %p405_p5 = scmp.ge.s32.totalorder %s633_s15, 1 }
   0xa   : > { %p689_p4 = por %p862_p1, %p83_p0  ;;  %p120_p7 = scmp.lt.s32.totalorder %s633_s15, 3 }
   0xb   : > { %p694_p6 = por %p113_p3, %p83_p0  ;;  %s133_s22 = sshll.u32 %s858_s0, 4  ;;  %s134_s22 = int_to_ptr.vmem [resolvable:$true] %s133_s22 }
   0xc   : > { %s865_s18 = scalar_select %p689_p4, 1, 0 }
   0xd   : > { %s866_s19 = scalar_select %p694_p6, 1, 0 }
   0xe   : > { %p702_p8 = pnand %p405_p5, %p120_p7  ;;  %s144_s26 = sshll.u32 %s859_s1, 4  ;;  %s145_s26 = int_to_ptr.vmem [resolvable:$true] %s144_s26 }
   0xf   : > { %s719_s28 = sadd.s32 1, %s633_s15   ;;  %s499_s30 = scalar_lea.vmem %s134_s22, 32 }
  0x10   : > { %s867_s23 = scalar_select %p702_p8, 1, 0 }
  0x11   : > { %p444_p10 = pneg %p702_p8  ;;  %s67_s29 = ssub.s32 %s633_s15, %s719_s28 }
  0x12   : > { %p500_p12 = scmp.ne.s32.totalorder %s134_s22, %s499_s30  ;;  %p507_p5 = scmp.lt.s32.totalorder %s134_s22, %s134_s22 }
  0x13   : > { %p714_p11 = pnand %p444_p10, %p862_p1  ;;  %p508_p7 = scmp.lt.s32.totalorder %s499_s30, %s499_s30 }
  0x15   : > { %p501_p13 = pneg %p714_p11  ;;  %p509_p9 = por %p508_p7, %p507_p5 }
  0x17   : > { %p502_p0 = pnand %p501_p13, %p500_p12 }
  0x19   : > { %p503_p3 = pneg %p502_p0 }
  0x1b   : > { %p510_p2 = pnand %p509_p9, %p503_p3 }
  0x1d   : > { %513 = shalt.err (!%p510_p2)
}
  0x1e   : > { %s635_s4 = smov [#allocation2]   ;;  %s514_s5 = scalar_lea.vmem %s145_s26, 16 }
  0x1f   : > { %447 = dma.vmem_to_smem (!%p714_p11), %s134_s22, 32, %s635_s4, [#allocation5]  }
  0x20   : > { %p515_p10 = scmp.ne.s32.totalorder %s145_s26, %s514_s5  ;;  %p522_p4 = scmp.lt.s32.totalorder %s145_s26, %s145_s26 }
  0x21   : > { %p523_p8 = scmp.lt.s32.totalorder %s514_s5, %s514_s5 }
  0x22   : > { %p517_p1 = pnand %p515_p10, %p501_p13 }
  0x23   : > { %p524_p12 = por %p523_p8, %p522_p4 }
  0x24   : > { %p518_p6 = pneg %p517_p1 }
  0x26   : > { %p525_p0 = pnand %p524_p12, %p518_p6 }
  0x28   : > { %528 = shalt.err (!%p525_p0)
}
  0x29   : > { %s636_s6 = smov [#allocation6]   ;;  %p68_p2 = scmp.eq.s32.totalorder %s67_s29, 0 }
  0x2a   : > { %450 = dma.vmem_to_smem (!%p714_p11), %s145_s26, 16, %s636_s6, [#allocation7]  }
  0x2b   : > { %s70_s7 = sadd.s32 1, %s629_s14  ;;  %p77_p1 = scmp.ne.s32.totalorder %s629_s14, %s625_s13 }
  0x2c   : > { %p78_p9 = scmp.eq.s32.totalorder %s633_s15, 0  ;;  %p869_p6 = scmp.eq.s32.totalorder %s680_s16, 1 }
  0x2d   : > { %s734_s8 = scalar_select %p68_p2, %s629_s14, %s70_s7  }
  0x2e   : > { %p79_p4 = por %p78_p9, %p77_p1  ;;  %p738_p8 = por %p869_p6, %p77_p1 }
  0x2f   : > { %p461_p13 = scmp.lt.s32.totalorder %s633_s15, 2  ;;  %s155_s10 = sand.u32 1, %s629_s14  }
  0x30   : > { %s409_s11 = sshll.u32 %s155_s10, 3  ;;  %s410_s17 = sshll.u32 %s633_s15, 7 }
  0x31   : > { %s748_s22 = scalar_lea.hbm %s860_s2, %s410_s17  ;;  %s159_s24 = scalar_lea.vmem [#allocation8], %s409_s11 }
  0x32   : > { %s166_s25 = sshll.u32 %s159_s24, 4  ;;  %p752_p11 = pnand %p461_p13, %p79_p4  ;;  %s750_s25 = int_to_ptr.vmem [resolvable:$true] %s166_s25 }
  0x33   : > { %s156_s27 = scalar_lea.sflag [#allocation3], %s155_s10  ;;  %s529_s29 = scalar_lea.hbm %s748_s22, 128 }
  0x34   : > { %p530_p3 = scmp.ne.s32.totalorder %s748_s22, %s529_s29  ;;  %p531_p5 = pneg %p752_p11 }
  0x35   : > { %s534_s5 = scalar_lea.hbm %s860_s2, 256  ;;  %p535_p12 = scmp.lt.u32.totalorder %s748_s22, %s860_s2 }
  0x36   : > { %p532_p7 = pnand %p531_p5, %p530_p3  ;;  %p536_p0 = scmp.lt.u32.totalorder %s534_s5, %s529_s29 }
  0x37   : > { %p538_p1 = scmp.lt.u32.totalorder %s529_s29, %s748_s22 }
  0x38   : > { %p533_p10 = pneg %p532_p7  ;;  %p537_p2 = por %p536_p0, %p535_p12 }
  0x3a   : > { %p539_p9 = por %p538_p1, %p537_p2 }
  0x3c   : > { %p540_p4 = pnand %p539_p9, %p533_p10 }
  0x3e   : > { %543 = shalt.err (!%p540_p4)
}
  0x3f   : > { %s544_s10 = scalar_lea.vmem %s750_s25, 128  ;;  %s637_s11 = smov [#allocation8]  }
  0x40   : > { %p545_p6 = scmp.ne.s32.totalorder %s750_s25, %s544_s10  ;;  %s549_s17 = sshll.u32 %s637_s11, 4  ;;  %s550_s17 = int_to_ptr.vmem [resolvable:$false] %s549_s17 }
  0x41   : > { %s551_s20 = scalar_lea.vmem %s550_s17, 256  ;;  %p552_p7 = scmp.lt.s32.totalorder %s750_s25, %s550_s17 }
  0x42   : > { %p547_p13 = pnand %p545_p6, %p531_p5  ;;  %p553_p12 = scmp.lt.s32.totalorder %s551_s20, %s544_s10 }
  0x44   : > { %p548_p3 = pneg %p547_p13  ;;  %p554_p0 = por %p553_p12, %p552_p7 }
  0x46   : > { %p555_p2 = pnand %p554_p0, %p548_p3 }
  0x48   : > { %558 = shalt.err (!%p555_p2)
}
  0x49   : > { %454 = dma.hbm_to_vmem [thread:$0]  (!%p752_p11), %s748_s22, 128, %s750_s25, %s156_s27  }
  0x4a   : > { %p872_p10 = scmp.ne.s32.totalorder %s867_s23, 0 }
  0x4b   : > { %p873_p5 = scmp.eq.s32.totalorder (!%p872_p10), %s680_s16, 0 }
  0x4c   : > { %175 = sbr.rel (%p872_p10) target bundleno = 136 (0x88), region = 32 }
  0x53   : > { %604 = dma.done.wait (%p873_p5), [#allocation5], 32   ;;  %p874_p1 = pmov %p873_p5 }
  0x55   : > { %606 = vsyncadd (%p874_p1), [#allocation5], 4294967264  ;;  %p875_p9 = pmov %p874_p1 }
  0x56   : > { %p876_p4 = pmov %p874_p1 }
  0x57   : > { %608 = dma.done.wait (%p875_p9), [#allocation7], 16  }
  0x58   : > { %610 = vsyncadd (%p876_p4), [#allocation7], 4294967280  ;;  %s792_s21 = sand.u32 1, %s625_s13   ;;  %p877_p11 = scmp.ne.s32.totalorder %s865_s18, 0 }
  0x59   : > { %s414_s23 = sshll.u32 %s792_s21, 3  ;;  %s186_s22 = scalar_lea.sflag [#allocation3], %s792_s21 }
  0x5a   : > { %s189_s24 = scalar_lea.vmem [#allocation8], %s414_s23 }
  0x5b   : > { %612 = dma.done.wait (%p877_p11), %s186_s22, 128  }
  0x5c   : > { %614 = vsyncadd (%p877_p11), %s186_s22, 4294967168 }
  0x5d   : > { %194 = sfence }
  0x5e   : > { %s214_s25 = sld [smem:[#allocation2]]  ;;  %s416_s26 = sld [smem:[#allocation2 + $0x1]]  ;;  %v213_v0 = vld [vmem:[%s189_s24] sm:$0x3f] }
  0x5f   : > { %s417_s27 = sld [smem:[#allocation2 + $0x2]]  ;;  %s418_s29 = sld [smem:[#allocation2 + $0x3]] }
  0x60   : > { %s419_s30 = sld [smem:[#allocation2 + $0x4]]  ;;  %s420_s4 = sld [smem:[#allocation2 + $0x5]] }
  0x61   : > { %s421_s5 = sld [smem:[#allocation2 + $0x80]]  ;;  %s422_s6 = sld [smem:[#allocation2 + $0x81]] }
  0x62   : > { %s423_s7 = sld [smem:[#allocation2 + $0x82]]  ;;  %s424_s10 = sld [smem:[#allocation2 + $0x83]] }
  0x63   : > { %s800_s11 = sld [smem:[#allocation2 + $0x84]]  ;;  %s802_s18 = sld [smem:[#allocation2 + $0x85]] }
  0x64   : > { %v228_v1 = vstv %s214_s25  ;;  %v232_v2 = vstv %s416_s26  ;;  %s804_s17 = sld [smem:[#allocation6]]  ;;  %s427_s20 = sld [smem:[#allocation6 + $0x1]] }
  0x65   : > { %v229_v3 = vmul.f32 %v228_v1, %v213_v0  ;;  %v233_v4 = vmul.f32 %v232_v2, %v213_v0  ;;  %v244_v5 = vstv %s417_s27  ;;  %v256_v6 = vstv %s418_s29  ;;  %s415_s23 = sshll.u32 %s792_s21, 1  ;;  %s429_s25 = sshll.u32 %s680_s16, 5 }
  0x66   : > { %v245_v7 = vmul.f32 %v244_v5, %v213_v0  ;;  %v257_v8 = vmul.f32 %v256_v6, %v213_v0  ;;  %v268_v9 = vstv %s419_s30  ;;  %v280_v10 = vstv %s420_s4  ;;  %s212_s22 = scalar_lea.vmem [#allocation9], %s415_s23  ;;  %s816_s29 = scalar_lea.hbm %s861_s3, %s429_s25 }
  0x67   : > { %v235_v11 = vrot.slane %v233_v4, 1  ;;  %v269_v12 = vmul.f32 %v268_v9, %v213_v0  ;;  %v281_v14 = vmul.f32 %v280_v10, %v213_v0  ;;  %v230_v15 = vstv %s421_s5  ;;  %s312_s24 = sshll.u32 %s212_s22, 4  ;;  %s299_s30 = scalar_lea.sflag [#allocation4], %s792_s21  ;;  %s811_s24 = int_to_ptr.vmem [resolvable:$true] %s312_s24 }
  0x68   : > { %v247_v13 = vrot.slane %v245_v7, 2  ;;  %v259_v17 = vrot.slane %v257_v8, 3  ;;  %v231_v19 = vmul.f32 %v230_v15, %v213_v0  ;;  %v238_v20 = vstv %s422_s6  ;;  %s559_s4 = scalar_lea.vmem %s811_s24, 32  ;;  %s638_s16 = smov [#allocation9]  }
  0x69   : > { %v237_v16 = vadd.f32 %v235_v11, %v229_v3  ;;  %v271_v18 = vrot.slane %v269_v12, 4  ;;  %v250_v21 = vstv %s423_s7  ;;  %v262_v22 = vstv %s424_s10  ;;  %p560_p6 = scmp.ne.s32.totalorder %s811_s24, %s559_s4  ;;  %s563_s5 = sshll.u32 %s638_s16, 4  ;;  %s564_s5 = int_to_ptr.vmem [resolvable:$false] %s563_s5 }
  0x6a   : > { %v274_v23 = vstv %s800_s11  ;;  %v239_v25 = vmul.f32 %v238_v20, %v213_v0  ;;  %v251_v26 = vmul.f32 %v250_v21, %v213_v0  ;;  %v263_v27 = vmul.f32 %v262_v22, %v213_v0  ;;  %s565_s6 = scalar_lea.vmem %s564_s5, 64  ;;  %p566_p7 = scmp.lt.s32.totalorder %s811_s24, %s564_s5 }
  0x6b   : > { %v249_v24 = vadd.f32 %v247_v13, %v237_v16  ;;  %v283_v28 = vrot.slane %v281_v14, 5  ;;  %v286_v29 = vstv %s802_s18  ;;  %v275_v33 = vmul.f32 %v274_v23, %v213_v0  ;;  %p561_p13 = pnand %p560_p6, %p738_p8  ;;  %p567_p12 = scmp.lt.s32.totalorder %s565_s6, %s559_s4 }
  0x6c   : > { %v241_v31 = vrot.slane %v239_v25, 1  ;;  %v253_v32 = vrot.slane %v251_v26, 2  ;;  %v265_v36 = vrot.slane %v263_v27, 3  ;;  %v287_v37 = vmul.f32 %v286_v29, %v213_v0 }
  0x6d   : > { %v261_v30 = vadd.f32 %v259_v17, %v249_v24  ;;  %v292_v38 = vstv %s804_s17  ;;  %v277_v41 = vrot.slane %v275_v33, 4  ;;  %v295_v46 = vstv %s427_s20  ;;  %p562_p3 = pneg %p561_p13  ;;  %p568_p0 = por %p567_p12, %p566_p7 }
  0x6e   : > { %v243_v35 = vadd.f32 %v241_v31, %v231_v19  ;;  %v289_v44 = vrot.slane %v287_v37, 5 }
  0x6f   : > { %v273_v34 = vadd.f32 %v271_v18, %v261_v30  ;;  %p569_p2 = pnand %p568_p0, %p562_p3 }
  0x70   : > { %v255_v40 = vadd.f32 %v253_v32, %v243_v35 }
  0x71   : > { %v285_v39 = vadd.f32 %v283_v28, %v273_v34 }
  0x72   : > { %v267_v43 = vadd.f32 %v265_v36, %v255_v40 }
  0x73   : > { %v293_v42 = vadd.f32 %v292_v38, %v285_v39 }
  0x74   : > { %v279_v45 = vadd.f32 %v277_v41, %v267_v43 }
  0x75   : > { %294 = vst [vmem:[%s212_s22] sm:$0x1] %v293_v42 }
  0x76   : > { %v291_v47 = vadd.f32 %v289_v44, %v279_v45 }
  0x78   : > { %v296_v48 = vadd.f32 %v295_v46, %v291_v47 }
  0x7a   : > { %297 = vst [vmem:[%s212_s22 + $0x1] sm:$0x1] %v296_v48 }
  0x7b   : > { %572 = shalt.err (!%p569_p2)
}
  0x7c   : > { %s573_s21 = scalar_lea.hbm %s816_s29, 32  ;;  %s577_s11 = scalar_lea.hbm %s861_s3, 64 }
  0x7d   : > { %p574_p10 = scmp.ne.s32.totalorder %s816_s29, %s573_s21  ;;  %p578_p9 = scmp.lt.u32.totalorder %s816_s29, %s861_s3 }
  0x7e   : > { %p579_p4 = scmp.lt.u32.totalorder %s577_s11, %s573_s21  ;;  %p581_p6 = scmp.lt.u32.totalorder %s573_s21, %s816_s29 }
  0x7f   : > { %p575_p5 = pnand %p574_p10, %p738_p8 }
  0x80   : > { %p580_p11 = por %p579_p4, %p578_p9 }
  0x81   : > { %p576_p1 = pneg %p575_p5 }
  0x82   : > { %p582_p13 = por %p581_p6, %p580_p11 }
  0x84   : > { %p583_p3 = pnand %p582_p13, %p576_p1 }
  0x86   : > { %586 = shalt.err (!%p583_p3)
}
  0x87   : > { %442 = dma.vmem_to_hbm [thread:$0]  (%p738_p8), %s811_s24, 32, %s816_s29, %s299_s30  }
  0x88 PF: > { %s324_s20 = sand.u32 1, %s621_s12   ;;  %p878_p7 = scmp.ne.s32.totalorder %s866_s19, 0 }
  0x89   : > { %p879_p12 = scmp.ge.s32.totalorder %s633_s15, 2  ;;  %s325_s23 = scalar_lea.sflag [#allocation4], %s324_s20 }
  0x8b   : > { %p456_p0 = pnand %p879_p12, %p878_p7 }
  0x8d   : > { %616 = dma.done.wait (!%p456_p0), %s325_s23, 32  }
  0x8e   : > { %618 = vsyncadd (!%p456_p0), %s325_s23, 4294967264  ;;  %p18_p2 = scmp.ge.s32.totalorder %s719_s28, 4   ;;  %s880_s12 = smov %s625_s13 }
  0x8f   : > { %s881_s13 = smov %s629_s14  ;;  %s882_s14 = smov %s734_s8 }
  0x90   : > { %s883_s15 = smov %s719_s28  ;;  %20 = sbr.rel (!%p18_p2) target bundleno = 7 (0x7), region = 86 }
  0x97   :  { %330 = vsyncpa [#allocation3], 1 }
  0x98   :  { %332 = vsyncpa [#allocation3 + $0x1], 1 }
  0x99   :  { %333 = vsyncpa [#allocation4], 1 }
  0x9a   :  { %335 = vsyncpa [#allocation4 + $0x1], 1 }
  0x9b   :  { %336 = vsyncpa [#allocation5], 1 }
  0x9c   :  { %338 = vsyncpa [#allocation5 + $0x1], 1 }
  0x9d   :  { %339 = vsyncpa [#allocation7], 1 }

</bundles_post_ra>
